<compile_context>
chip_gen: v7x
topology: tpu7x:2x2x1
jax: 0.10.0
libtpu: 0.0.40
codegen_flags: <defaults>
</compile_context>

<pallas_src>
from functools import partial

import numpy as np
import jax
import jax.numpy as jnp
from jax import lax
from jax.experimental import pallas as pl
from jax.experimental.pallas import tpu as pltpu

LATENT = 4
# (name, flat_size, view_shape_fn(batch))  -- mirrors the PyTorch .view() calls
HEADS = [
    ("w_mlp1_0", 6,  lambda b: (b, 6, 1)),
    ("b_mlp1_0", 6,  lambda b: (b, 6)),
    ("w_mlp1_2", 24, lambda b: (b, 8, 3)),
    ("b_mlp1_2", 8,  lambda b: (b, 8)),
    ("w_mlp1_4", 40, lambda b: (b, 10, 4)),
    ("b_mlp1_4", 10, lambda b: (b, 10)),
    ("w_mlp1_6", 25, lambda b: (b, 5, 5)),
    ("b_mlp1_6", 5,  lambda b: (b, 5)),
    ("g",        5,  lambda b: (5, b)),
    ("R",        5,  lambda b: (5, b)),
    ("m_hp",     5,  lambda b: (5, b)),
    ("m_bp",     5,  lambda b: (5, b)),
    ("m_lp",     5,  lambda b: (5, b)),
    ("w_mlp2_0", 50, lambda b: (b, 10, 5)),
    ("b_mlp2_0", 10, lambda b: (b, 10)),
    ("w_mlp2_2", 40, lambda b: (b, 8, 5)),
    ("b_mlp2_2", 8,  lambda b: (b, 8)),
    ("w_mlp2_4", 24, lambda b: (b, 6, 4)),
    ("b_mlp2_4", 6,  lambda b: (b, 6)),
    ("w_mlp2_6", 3,  lambda b: (b, 1, 3)),
    ("b_mlp2_6", 1,  lambda b: (b, 1)),
]
TOTAL_OUT = sum(s for _, s, _ in HEADS)   # 291

# (offset, size) of every head inside the flat 384-lane slab — for consumers
# that want to pl.ds into the slab instead of paying the 21-way split.
HEAD_SLICES = {}
_off = 0
for _name, _size, _ in HEADS:
    HEAD_SLICES[_name] = (_off, _size)
    _off += _size

B_PAD = 8       # padded batch rows (sublanes) for the single-frame slab
O_PAD = 384     # fused-head output lanes (3 * 128 -> lane-dense, unmasked vst)

# log10 ratios are base-independent:
#   (log10 x - log10 1e3)/(log10 5e5 - log10 1e3) == (ln x - ln 1e3)/(ln 5e5 - ln 1e3)
_LOG_LO = float(np.log(1000.0))
_INV_LOG_SPAN = float(1.0 / (np.log(500000.0) - np.log(1000.0)))
_PAD_FILL = 1000.0          # pad control value -> tone=0, log stays finite


# -----------------------------------------------------------------------------
# Kernels
# -----------------------------------------------------------------------------
def _hyper_kernel_small(z_ref, w0_ref, w1_ref, b_ref, o_ref, zpad_ref):
    """Single-shot (B <= 8) kernel.

    z_ref : [B, 2]  raw controls (full array, no wrapper padding)
    w0_ref/w1_ref/b_ref : [8, 384]  fused affine, pre-broadcast across sublanes
    o_ref : [8, 384]  padded lane-dense slab of generated parameters
    zpad_ref : [8, 2] VMEM scratch used to build the padded control tile
    Pure VPU/EUP — no MXU, no sublane broadcasts, full unmasked stores.
    """
    B = z_ref.shape[0]
    if B == B_PAD:
        z = z_ref[...]
    else:
        # Build the padded control tile in-kernel (review item: no wrapper HLOs).
        zpad_ref[...] = jnp.full((B_PAD, 2), _PAD_FILL, jnp.float32)
        zpad_ref[0:B, :] = z_ref[...]
        z = zpad_ref[...]                                        # [8, 2]

    tone_n = (z[:, 0:1] - 1000.0) * (1.0 / 19000.0)              # [8, 1]
    # maximum() keeps log finite for pad rows / defensive against bad inputs.
    gain_n = (jnp.log(jnp.maximum(z[:, 1:2], 1e-30)) - _LOG_LO) * _INV_LOG_SPAN
    # Three element-wise FMAs over 3 output vregs (weights already [8, 384]).
    o_ref[...] = tone_n * w0_ref[...] + gain_n * w1_ref[...] + b_ref[...]


def _hyper_kernel_batched(z_ref, w0_ref, w1_ref, b_ref, o_ref):
    """Batched kernel: one (TB, 384) output block per grid step.

    Weights are resident (same block every step); the [1,384]->[TB,384]
    sublane broadcast is amortized over the whole tile.
    """
    z = z_ref[...]                                               # [TB, 2]
    tone_n = (z[:, 0:1] - 1000.0) * (1.0 / 19000.0)              # [TB, 1]
    gain_n = (jnp.log(jnp.maximum(z[:, 1:2], 1e-30)) - _LOG_LO) * _INV_LOG_SPAN
    o_ref[...] = (tone_n * w0_ref[0:1, :]
                  + gain_n * w1_ref[0:1, :]
                  + b_ref[0:1, :])


# -----------------------------------------------------------------------------
# pallas_call wrappers
# -----------------------------------------------------------------------------
def _call_small(w0, w1, bb, z):
    # No grid / no BlockSpecs: full arrays ([B,2], 3x[8,384] -> [8,384]) are
    # staged whole into VMEM (~40 KiB); nothing to pipeline at this size.
    return pl.pallas_call(
        _hyper_kernel_small,
        out_shape=jax.ShapeDtypeStruct((B_PAD, O_PAD), jnp.float32),
        scratch_shapes=[pltpu.VMEM((B_PAD, 2), jnp.float32)],
    )(z, w0, w1, bb)


def _call_batched(w0, w1, bb, z, tb):
    Bp = z.shape[0]                     # multiple of tb (wrapper guarantees it)
    return pl.pallas_call(
        _hyper_kernel_batched,
        out_shape=jax.ShapeDtypeStruct((Bp, O_PAD), jnp.float32),
        grid=(Bp // tb,),
        in_specs=[
            pl.BlockSpec((tb, 2), lambda i: (i, 0)),
            pl.BlockSpec((B_PAD, O_PAD), lambda i: (0, 0)),   # resident weights
            pl.BlockSpec((B_PAD, O_PAD), lambda i: (0, 0)),
            pl.BlockSpec((B_PAD, O_PAD), lambda i: (0, 0)),
        ],
        out_specs=pl.BlockSpec((tb, O_PAD), lambda i: (i, 0)),
        compiler_params=pltpu.CompilerParams(
            dimension_semantics=("parallel",)),   # both v7x TCs get work
    )(z, w0, w1, bb)


@jax.jit
def _forward_slab_small_jit(w0, w1, bb, z):
    return _call_small(w0, w1, bb, z.astype(jnp.float32))


@partial(jax.jit, static_argnames=("tb",))
def _forward_slab_batched_jit(w0, w1, bb, z, tb):
    B = z.shape[0]
    Bp = ((B + tb - 1) // tb) * tb
    zf = z.astype(jnp.float32)
    if Bp != B:   # pad batch once (amortized over the large batch)
        zf = jnp.concatenate(
            [zf, jnp.full((Bp - B, 2), _PAD_FILL, jnp.float32)], axis=0)
    return _call_batched(w0, w1, bb, zf, tb)


@jax.jit
def _forward_heads_jit(w0, w1, bb, z):
    slab = _call_small(w0, w1, bb, z.astype(jnp.float32))
    B = z.shape[0]
    results = {}
    for name, size, view in HEADS:
        off = HEAD_SLICES[name][0]
        # Same row-major semantics as torch .view() (incl. the (5, B) views).
        results[name] = slab[:B, off:off + size].reshape(view(B))
    return results


# -----------------------------------------------------------------------------
# Public API
# -----------------------------------------------------------------------------
def hypernetwork_forward_slab(params, z, x=None):
    """RECOMMENDED single-frame entry point (B <= 8).

    Returns the padded lane-dense [8, 384] f32 slab of generated MODEL1
    parameters.  Rows >= B and lanes >= 291 are pad; consumers should index
    with HEAD_SLICES (keeps the post-kernel path free of masked slices)."""
    del x  # TODO(synk): MODEL1(x) consumer is not defined in the spec.
    assert z.shape[0] <= B_PAD, "use hypernetwork_forward_slab_batched for B > 8"
    return _forward_slab_small_jit(params["W0b"], params["W1b"], params["Bb"], z)


def hypernetwork_forward_slab_batched(params, z, x=None, tb=512):
    """Batched entry point: grid over batch blocks of `tb` rows, parallel
    semantics (uses both v7x TensorCores).  Returns [ceil(B/tb)*tb, 384];
    rows >= B are pad."""
    del x
    return _forward_slab_batched_jit(
        params["W0b"], params["W1b"], params["Bb"], z, tb)


def hypernetwork_forward(params, z, x=None):
    """API-parity path (parity/testing only — NOT the recommended hot path):
    dict of generated parameter tensors with the same .view() shapes as the
    PyTorch forward (incl. the (5, B) filter views).  The 21-way split lives
    here, off the recommended slab path."""
    del x  # TODO(synk): MODEL1(x) consumer is not defined in the spec.
    assert z.shape[0] <= B_PAD
    return _forward_heads_jit(params["W0b"], params["W1b"], params["Bb"], z)


def init_params(key):
    """PyTorch-style U(-k, k) init of every nn.Linear, offline fusion of the
    whole affine chain (no nonlinearity between fc1 and the heads in the spec),
    then one-time padding + sublane pre-broadcast for the kernel."""
    keys = jax.random.split(key, 2 + 2 * len(HEADS))
    ki = iter(keys)

    def linear(k_w, k_b, fan_in, fan_out):
        bound = 1.0 / np.sqrt(fan_in)
        W = jax.random.uniform(k_w, (fan_out, fan_in), jnp.float32, -bound, bound)
        b = jax.random.uniform(k_b, (fan_out,), jnp.float32, -bound, bound)
        return W, b

    W1, b1 = linear(next(ki), next(ki), 2, LATENT)               # fc1: 2 -> 4

    w_blocks, b_blocks = [], []
    for _, size, _ in HEADS:                                     # 21 heads: 4 -> size
        Wk, bk = linear(next(ki), next(ki), LATENT, size)
        w_blocks.append(Wk.T)                                    # [LATENT, size]
        b_blocks.append(bk)
    Wall = jnp.concatenate(w_blocks, axis=1)                     # [4, 291]
    ball = jnp.concatenate(b_blocks, axis=0)                     # [291]

    # Offline affine composition (valid: no activation after fc1 in the spec).
    Weff = W1.T @ Wall                                           # [2, 291]
    beff = b1 @ Wall + ball                                      # [291]

    # Pad to 384 lanes and pre-broadcast across 8 sublanes ONCE (init-time),
    # so the kernel body is pure element-wise FMA with no relayouts.
    Weff_p = jnp.zeros((2, O_PAD), jnp.float32).at[:, :TOTAL_OUT].set(Weff)
    beff_p = jnp.zeros((O_PAD,), jnp.float32).at[:TOTAL_OUT].set(beff)
    W0b = jnp.tile(Weff_p[0:1, :], (B_PAD, 1))                   # [8, 384]
    W1b = jnp.tile(Weff_p[1:2, :], (B_PAD, 1))                   # [8, 384]
    Bb = jnp.tile(beff_p[None, :], (B_PAD, 1))                   # [8, 384]

    return {
        "W0b": W0b, "W1b": W1b, "Bb": Bb,                        # used by kernels
        "W1": W1, "b1": b1, "Wall": Wall, "ball": ball,          # raw (reference)
    }


def _reference_flat(params, z):
    """Pure-JAX, un-fused reference (uses the RAW per-layer weights).
    NOTE: no log-guard here, so it assumes gain > 0 (the stated input domain)."""
    tone = (z[:, 0] - 1000.0) / 19000.0
    gain = (jnp.log(z[:, 1]) - _LOG_LO) * _INV_LOG_SPAN
    zn = jnp.stack([tone, gain], axis=1).astype(jnp.float32)
    h = zn @ params["W1"].T + params["b1"]
    return h @ params["Wall"] + params["ball"]


if __name__ == "__main__":
    key = jax.random.PRNGKey(0)
    k_p, k_t, k_g, k_x, k_tb, k_gb = jax.random.split(key, 6)

    params = init_params(k_p)

    # ---- single-frame path (B = 2), matches the PyTorch forward shapes ------
    B = 2
    tone = jax.random.uniform(k_t, (B,), jnp.float32, 1000.0, 20000.0)
    gain = jax.random.uniform(k_g, (B,), jnp.float32, 1000.0, 500000.0)
    z = jnp.stack([tone, gain], axis=1)                          # [B, 2] raw controls
    x = jax.random.normal(k_x, (B, 16, 1), jnp.float32)          # unused (MODEL1 undefined)

    slab = hypernetwork_forward_slab(params, z, x)               # [8, 384] padded slab
    slab = jax.block_until_ready(slab)
    heads = hypernetwork_forward(params, z, x)                   # parity dict
    heads = jax.block_until_ready(heads)

    ref = np.asarray(_reference_flat(params, z))                 # [B, 291]
    np.testing.assert_allclose(np.asarray(slab)[:B, :TOTAL_OUT], ref,
                               rtol=1e-5, atol=1e-5)
    for name, size, view in HEADS:
        off = HEAD_SLICES[name][0]
        expect = ref[:, off:off + size].reshape(view(B))
        np.testing.assert_allclose(np.asarray(heads[name]), expect,
                                   rtol=1e-5, atol=1e-5)

    # ---- batched path (grid over batch, parallel semantics) -----------------
    Bb_ = 500                                                    # ragged on purpose
    tone_b = jax.random.uniform(k_tb, (Bb_,), jnp.float32, 1000.0, 20000.0)
    gain_b = jax.random.uniform(k_gb, (Bb_,), jnp.float32, 1000.0, 500000.0)
    zb = jnp.stack([tone_b, gain_b], axis=1)
    slab_b = hypernetwork_forward_slab_batched(params, zb, tb=128)
    slab_b = jax.block_until_ready(slab_b)
    ref_b = np.asarray(_reference_flat(params, zb))
    np.testing.assert_allclose(np.asarray(slab_b)[:Bb_, :TOTAL_OUT], ref_b,
                               rtol=1e-5, atol=1e-5)

    print("KERNEL_OK")
</pallas_src>

<mosaic_0001>
module attributes {stable_mosaic.version = 11 : i64} {
  func.func @_hyper_kernel_small(%arg0: memref<2x2xf32, #tpu.memory_space<vmem>>, %arg1: memref<8x384xf32, #tpu.memory_space<vmem>>, %arg2: memref<8x384xf32, #tpu.memory_space<vmem>>, %arg3: memref<8x384xf32, #tpu.memory_space<vmem>>, %arg4: memref<8x384xf32, #tpu.memory_space<vmem>>, %arg5: memref<8x2xf32, #tpu.memory_space<vmem>>) attributes {dimension_semantics = [], scalar_prefetch = 0 : i64, scratch_operands = 1 : i64, tpu.core_type = #tpu.core_type<tc>} {
    %cst = arith.constant 1.000000e+03 : f32
    %0 = vector.broadcast %cst : f32 to vector<8x2xf32>
    %c0 = arith.constant 0 : index
    %c0_0 = arith.constant 0 : index
    %1 = vector.load %arg5[%c0, %c0_0] : memref<8x2xf32, #tpu.memory_space<vmem>>, vector<8x2xf32>
    tpu.vector_store %arg5[%c0, %c0_0], %0 {strides = array<i32>} : memref<8x2xf32, #tpu.memory_space<vmem>>, vector<8x2xf32>,
    %c0_1 = arith.constant 0 : index
    %c0_2 = arith.constant 0 : index
    %2 = vector.load %arg0[%c0_1, %c0_2] : memref<2x2xf32, #tpu.memory_space<vmem>>, vector<2x2xf32>
    %c0_3 = arith.constant 0 : index
    %c0_4 = arith.constant 0 : index
    %3 = vector.load %arg5[%c0_3, %c0_4] : memref<8x2xf32, #tpu.memory_space<vmem>>, vector<2x2xf32>
    tpu.vector_store %arg5[%c0_3, %c0_4], %2 {strides = array<i32>} : memref<8x2xf32, #tpu.memory_space<vmem>>, vector<2x2xf32>,
    %c0_5 = arith.constant 0 : index
    %c0_6 = arith.constant 0 : index
    %4 = vector.load %arg5[%c0_5, %c0_6] : memref<8x2xf32, #tpu.memory_space<vmem>>, vector<8x2xf32>
    %5 = vector.extract_strided_slice %4 {offsets = [0, 0], sizes = [8, 1], strides = [1, 1]} : vector<8x2xf32> to vector<8x1xf32>
    %cst_7 = arith.constant 1.000000e+03 : f32
    %6 = vector.broadcast %cst_7 : f32 to vector<8x1xf32>
    %7 = arith.subf %5, %6 : vector<8x1xf32>
    %cst_8 = arith.constant 5.2631578E-5 : f32
    %8 = vector.broadcast %cst_8 : f32 to vector<8x1xf32>
    %9 = arith.mulf %7, %8 : vector<8x1xf32>
    %10 = vector.extract_strided_slice %4 {offsets = [0, 1], sizes = [8, 1], strides = [1, 1]} : vector<8x2xf32> to vector<8x1xf32>
    %cst_9 = arith.constant 1.000000e-30 : f32
    %11 = vector.broadcast %cst_9 : f32 to vector<8x1xf32>
    %12 = arith.maximumf %10, %11 : vector<8x1xf32>
    %13 = math.log %12 : vector<8x1xf32>
    %cst_10 = arith.constant 6.90775537 : f32
    %14 = vector.broadcast %cst_10 : f32 to vector<8x1xf32>
    %15 = arith.subf %13, %14 : vector<8x1xf32>
    %cst_11 = arith.constant 0.160911188 : f32
    %16 = vector.broadcast %cst_11 : f32 to vector<8x1xf32>
    %17 = arith.mulf %15, %16 : vector<8x1xf32>
    %c0_12 = arith.constant 0 : index
    %c0_13 = arith.constant 0 : index
    %18 = vector.load %arg1[%c0_12, %c0_13] : memref<8x384xf32, #tpu.memory_space<vmem>>, vector<8x384xf32>
    %19 = vector.broadcast %9 : vector<8x1xf32> to vector<8x384xf32>
    %20 = arith.mulf %19, %18 : vector<8x384xf32>
    %c0_14 = arith.constant 0 : index
    %c0_15 = arith.constant 0 : index
    %21 = vector.load %arg2[%c0_14, %c0_15] : memref<8x384xf32, #tpu.memory_space<vmem>>, vector<8x384xf32>
    %22 = vector.broadcast %17 : vector<8x1xf32> to vector<8x384xf32>
    %23 = arith.mulf %22, %21 : vector<8x384xf32>
    %24 = arith.addf %20, %23 : vector<8x384xf32>
    %c0_16 = arith.constant 0 : index
    %c0_17 = arith.constant 0 : index
    %25 = vector.load %arg3[%c0_16, %c0_17] : memref<8x384xf32, #tpu.memory_space<vmem>>, vector<8x384xf32>
    %26 = arith.addf %24, %25 : vector<8x384xf32>
    %c0_18 = arith.constant 0 : index
    %c0_19 = arith.constant 0 : index
    %27 = vector.load %arg4[%c0_18, %c0_19] : memref<8x384xf32, #tpu.memory_space<vmem>>, vector<8x384xf32>
    tpu.vector_store %arg4[%c0_18, %c0_19], %26 {strides = array<i32>} : memref<8x384xf32, #tpu.memory_space<vmem>>, vector<8x384xf32>,
    return
  }
}

</mosaic_0001>

<bundles_post_ra>
// kernel: _forward_slab_small_jit.1
= control target key start
LH: loop header
LB: loop body
LE: loop exit
PB: predicated region body
PF: predicated region fallthrough
CT: control target
= control target key end

     0   :  { %9 = vsyncpa [#allocation4], 0  ;;  %s306_s0 = inlined_call_operand.vmem [shape: f32[2,2], index: 0, kind: input, shape index: {}]   ;;  %s307_s1 = inlined_call_operand.hbm [shape: f32[8,384], index: 1, kind: input, shape index: {}]   ;;  %s308_s2 = inlined_call_operand.hbm [shape: f32[8,384], index: 2, kind: input, shape index: {}]   ;;  %s309_s3 = inlined_call_operand.hbm [shape: f32[8,384], index: 3, kind: input, shape index: {}]   ;;  %s310_s4 = inlined_call_operand.hbm [shape: f32[8,384], index: 4, kind: output, shape index: {}]  }
   0x1   :  { %10 = vsyncpa [#allocation7], 0 }
   0x2   :  { %11 = vsyncpa [#allocation5], 0  ;;  %s223_s15 = smov [#allocation6]   ;;  %s224_s17 = smov [#allocation3]  }
   0x3   :  { %s30_s16 = sshll.u32 %s223_s15, 4  ;;  %s20_s18 = sshll.u32 %s224_s17, 4  ;;  %s31_s16 = int_to_ptr.vmem [resolvable:$true] %s30_s16  ;;  %s21_s18 = int_to_ptr.vmem [resolvable:$true] %s20_s18 }
   0x4   :  { %s129_s21 = scalar_lea.hbm %s308_s2, 384 }
   0x5   :  { %p130_p0 = scmp.ne.s32.totalorder %s308_s2, %s129_s21  ;;  %p133_p1 = scmp.lt.u32.totalorder %s129_s21, %s308_s2 }
   0x7   :  { %p135_p2 = pnand %p133_p1, %p130_p0 }
   0x9   :  { %138 = shalt.err (!%p135_p2)
}
   0xa   :  { %s139_s26 = scalar_lea.vmem %s31_s16, 384  ;;  %p144_p4 = scmp.lt.s32.totalorder %s31_s16, %s31_s16 }
   0xb   :  { %p140_p3 = scmp.ne.s32.totalorder %s31_s16, %s139_s26  ;;  %p145_p5 = scmp.lt.s32.totalorder %s139_s26, %s139_s26 }
   0xd   :  { %p146_p6 = por %p145_p5, %p144_p4 }
   0xf   :  { %p147_p7 = pnand %p146_p6, %p140_p3 }
  0x11   :  { %150 = shalt.err (!%p147_p7)
}
  0x12   :  { %33 = dma.hbm_to_vmem [thread:$0]  %s308_s2, 384, %s31_s16, [#allocation7]  }
  0x13   :  { %s151_s5 = scalar_lea.hbm %s307_s1, 384 }
  0x14   :  { %p152_p8 = scmp.ne.s32.totalorder %s307_s1, %s151_s5  ;;  %p155_p9 = scmp.lt.u32.totalorder %s151_s5, %s307_s1 }
  0x16   :  { %p157_p10 = pnand %p155_p9, %p152_p8 }
  0x18   :  { %160 = shalt.err (!%p157_p10)
}
  0x19   :  { %s161_s10 = scalar_lea.vmem %s21_s18, 384  ;;  %p166_p12 = scmp.lt.s32.totalorder %s21_s18, %s21_s18 }
  0x1a   :  { %p162_p11 = scmp.ne.s32.totalorder %s21_s18, %s161_s10  ;;  %p167_p13 = scmp.lt.s32.totalorder %s161_s10, %s161_s10 }
  0x1c   :  { %p168_p0 = por %p167_p13, %p166_p12 }
  0x1e   :  { %p169_p1 = pnand %p168_p0, %p162_p11 }
  0x20   :  { %172 = shalt.err (!%p169_p1)
}
  0x21   :  { %23 = dma.hbm_to_vmem [thread:$0]  %s307_s1, 384, %s21_s18, [#allocation4]  }
  0x22   :  { %s225_s12 = smov [#allocation8]   ;;  %s173_s16 = scalar_lea.hbm %s309_s3, 384 }
  0x23   :  { %s40_s13 = sshll.u32 %s225_s12, 4  ;;  %p174_p2 = scmp.ne.s32.totalorder %s309_s3, %s173_s16  ;;  %s41_s13 = int_to_ptr.vmem [resolvable:$true] %s40_s13 }
  0x24   :  { %p177_p3 = scmp.lt.u32.totalorder %s173_s16, %s309_s3 }
  0x26   :  { %p179_p4 = pnand %p177_p3, %p174_p2 }
  0x28   :  { %182 = shalt.err (!%p179_p4)
}
  0x29   :  { %s183_s22 = scalar_lea.vmem %s41_s13, 384  ;;  %p188_p6 = scmp.lt.s32.totalorder %s41_s13, %s41_s13 }
  0x2a   :  { %p184_p5 = scmp.ne.s32.totalorder %s41_s13, %s183_s22  ;;  %p189_p7 = scmp.lt.s32.totalorder %s183_s22, %s183_s22 }
  0x2c   :  { %p190_p8 = por %p189_p7, %p188_p6 }
  0x2e   :  { %p191_p9 = pnand %p190_p8, %p184_p5 }
  0x30   :  { %194 = shalt.err (!%p191_p9)
}
  0x31   :  { %43 = dma.hbm_to_vmem [thread:$0]  %s309_s3, 384, %s41_s13, [#allocation7]  }
  0x32   :  { %217 = dma.done.wait [#allocation4], 384  }
  0x33   :  { %218 = vsyncadd [#allocation4], 4294966912 }
  0x34   :  { %219 = dma.done.wait [#allocation7], 768  }
  0x35   :  { %220 = vsyncadd [#allocation7], 4294966528  ;;  %vm53_vm0 = vcmask 15360   ;;  %v226_v0 = vmov 0   ;;  %v227_v1 = vmov 1000.0   ;;  %vm56_vm1 = vcmask 9216  }
  0x36   :  { %125 = vset.pattern.permute.xlu0 %v226_v0  ;;  %54 = vst.msk [vmem:[#allocation2] sm:$0xff] %vm53_vm0, %v227_v1  ;;  %v55_v2 = vld [vmem:[%s306_s0] sm:$0x3]  ;;  %v228_v7 = vmov 1   ;;  %v66_v13 = vld [vmem:[#allocation3] sm:$0xff]  ;;  %v67_v14 = vld [vmem:[#allocation3 + $0x8] sm:$0xff] }
  0x37   :  { %57 = vst.msk [vmem:[#allocation2] sm:$0x3] %vm56_vm1, %v55_v2  ;;  %v68_v15 = vld [vmem:[#allocation3 + $0x10] sm:$0xff]  ;;  %v77_v16 = vld [vmem:[#allocation6] sm:$0xff]  ;;  %v78_v17 = vld [vmem:[#allocation6 + $0x8] sm:$0xff]  ;;  %s229_s0 = smov [#allocation9]  }
  0x38   :  { %v79_v18 = vld [vmem:[#allocation6 + $0x10] sm:$0xff]  ;;  %v91_v26 = vld [vmem:[#allocation8] sm:$0xff]  ;;  %v92_v27 = vld [vmem:[#allocation8 + $0x8] sm:$0xff]  ;;  %s106_s3 = sshll.u32 %s229_s0, 4  ;;  %s107_s3 = int_to_ptr.vmem [resolvable:$true] %s106_s3 }
  0x39   :  { %v93_v28 = vld [vmem:[#allocation8 + $0x10] sm:$0xff]  ;;  %s195_s25 = scalar_lea.vmem %s107_s3, 384  ;;  %p200_p11 = scmp.lt.s32.totalorder %s107_s3, %s107_s3 }
  0x3a   :  { %p196_p10 = scmp.ne.s32.totalorder %s107_s3, %s195_s25  ;;  %p201_p12 = scmp.lt.s32.totalorder %s195_s25, %s195_s25 }
  0x3c   :  { %p202_p13 = por %p201_p12, %p200_p11 }
  0x3e   :  { %v58_v3 = vld [vmem:[#allocation2] sm:$0xff]  ;;  %p203_p0 = pnand %p202_p13, %p196_p10 }
  0x3f   :  { %v116_v4 = vadd.f32 -1000.0, %v58_v3  ;;  %v61_v5 = vmax.f32 %v58_v3, 1e-30 }
  0x41   :  { %v60_v6 = vmul.f32 5.2631578e-05, %v116_v4  ;;  %127 = vlog2.f32 %v61_v5 }
  0x43   :  { %71 = vperm.xlu0 %125, %v60_v6  }
  0x47   :  { %126 = vset.pattern.permute.xlu0 %v228_v7 }
  0x4b   :  { %v128_v8 = vpop.eup %127 }
  0x4c   :  { %v63_v9 = vmul.f32 0.6931472, %v128_v8 }
  0x4e   :  { %v117_v10 = vadd.f32 -6.9077554, %v63_v9 }
  0x50   :  { %v65_v11 = vmul.f32 0.16091119, %v117_v10 }
  0x52   :  { %82 = vperm.xlu0 %126, %v65_v11  }
  0xc2   :  { %v72_v12 = vpop.permute.xlu0 %71 }
  0xc3   :  { %v74_v19 = vmul.f32 %v72_v12, %v66_v13  ;;  %v75_v20 = vmul.f32 %v72_v12, %v67_v14  ;;  %v76_v22 = vmul.f32 %v72_v12, %v68_v15 }
  0xd1   :  { %v83_v21 = vpop.permute.xlu0 %82 }
  0xd2   :  { %v85_v23 = vmul.f32 %v83_v21, %v77_v16  ;;  %v86_v24 = vmul.f32 %v83_v21, %v78_v17  ;;  %v87_v25 = vmul.f32 %v83_v21, %v79_v18 }
  0xd4   :  { %v88_v29 = vadd.f32 %v85_v23, %v74_v19  ;;  %v89_v30 = vadd.f32 %v86_v24, %v75_v20  ;;  %v90_v31 = vadd.f32 %v87_v25, %v76_v22 }
  0xd6   :  { %v94_v32 = vadd.f32 %v91_v26, %v88_v29  ;;  %v95_v33 = vadd.f32 %v92_v27, %v89_v30  ;;  %v96_v34 = vadd.f32 %v93_v28, %v90_v31 }
  0xd8   :  { %97 = vst [vmem:[#allocation9] sm:$0xff] %v94_v32  ;;  %98 = vst [vmem:[#allocation9 + $0x8] sm:$0xff] %v95_v33 }
  0xd9   :  { %99 = vst [vmem:[#allocation9 + $0x10] sm:$0xff] %v96_v34 }
  0xda   :  { %206 = shalt.err (!%p203_p0)
}
  0xdb   :  { %s207_s28 = scalar_lea.hbm %s310_s4, 384 }
  0xdc   :  { %p208_p1 = scmp.ne.s32.totalorder %s310_s4, %s207_s28  ;;  %p211_p2 = scmp.lt.u32.totalorder %s207_s28, %s310_s4 }
  0xde   :  { %p213_p3 = pnand %p211_p2, %p208_p1 }
  0xe0   :  { %216 = shalt.err (!%p213_p3)
}
  0xe1   :  { %109 = dma.vmem_to_hbm [thread:$0]  %s107_s3, 384, %s310_s4, [#allocation5]  }
  0xe2   :  { %221 = dma.done.wait [#allocation5], 384  }
  0xe3   :  { %222 = vsyncadd [#allocation5], 4294966912 }
  0xe4   :  { %113 = vsyncpa [#allocation4], 1 }
  0xe5   :  { %114 = vsyncpa [#allocation7], 1 }
  0xe6   :  { %115 = vsyncpa [#allocation5], 1 }

</bundles_post_ra>
